<compile_context>
chip_gen: v7x
topology: tpu7x:2x2x1
jax: 0.10.0
libtpu: 0.0.40
codegen_flags: <defaults>
</compile_context>

<pallas_src>
import functools

import jax
import jax.numpy as jnp
from jax.experimental import pallas as pl
from jax.experimental.pallas import tpu as pltpu


# --------------------------------------------------------------------------
# Fused kernel: global avg/max pool  ->  fc1 -> ReLU -> fc2 -> sigmoid
# --------------------------------------------------------------------------
def _channel_attention_kernel(x_ref, w1_ref, w2_ref, o_ref, sum_acc, max_acc,
                              *, inv_hw, hw, t_hw):
    # x_ref   : (1, C, T)       one batch element, one slab of H*W lanes (native dtype)
    # w1_ref  : (Chid_pad, C)   fc1 weight (f32, zero-padded hidden rows)
    # w2_ref  : (C, Chid_pad)   fc2 weight (f32, zero-padded hidden cols)
    # o_ref   : (1, C, 1)       sigmoid channel attention
    # sum_acc : (C, 128) f32    lane-dense running sum  (128->1 reduce deferred to epilogue)
    # max_acc : (C, 128) f32    lane-dense running max
    t = pl.program_id(1)
    nt = pl.num_programs(1)
    c = sum_acc.shape[0]

    n_pieces = t_hw // 128      # 128-lane columns per full tile (static)
    rem = hw % t_hw             # static; 0 => every tile fully valid
    GROUP = 4                   # columns processed per fori iteration (amortizes loop overhead)

    @pl.when(t == 0)
    def _():
        sum_acc[...] = jnp.zeros_like(sum_acc)
        max_acc[...] = jnp.full_like(max_acc, -jnp.inf)

    def piece_update(off, limit=None):
        """Accumulate one (C, 128) column at lane offset `off` within this tile.
        `limit` (static int) masks lanes >= limit (tail tile only)."""
        start = off if isinstance(off, int) else pl.multiple_of(off, 128)
        col = x_ref[0, :, pl.ds(start, 128)].astype(jnp.float32)   # widen per column
        if limit is None:
            cs, cm = col, col
        else:
            lane = jax.lax.broadcasted_iota(jnp.int32, (c, 128), 1) + off
            valid = lane < limit
            cs = jnp.where(valid, col, 0.0)
            cm = jnp.where(valid, col, -jnp.inf)
        sum_acc[...] = sum_acc[...] + cs                       # pure VPU
        max_acc[...] = jnp.maximum(max_acc[...], cm)           # pure VPU

    def grouped_accum(ngroups):
        def body(g, carry):
            base = pl.multiple_of(g * (GROUP * 128), GROUP * 128)
            for p in range(GROUP):
                piece_update(base + p * 128)
            return carry
        jax.lax.fori_loop(0, ngroups, body, 0)

    def full_tile():
        if n_pieces <= GROUP:                 # tiny tile: fully static
            for p in range(n_pieces):
                piece_update(p * 128)
        else:                                 # n_pieces is a multiple of GROUP by construction
            grouped_accum(n_pieces // GROUP)

    def tail_tile():                          # runs once per batch element
        full_pieces = rem // 128              # fully-valid columns
        ngroups = full_pieces // GROUP
        if ngroups > 0:
            grouped_accum(ngroups)
        for p in range(ngroups * GROUP, full_pieces):
            piece_update(p * 128)
        if rem % 128:                         # the single partially-valid column
            piece_update(full_pieces * 128, limit=rem)

    if rem == 0:
        full_tile()
    else:
        @pl.when(t < nt - 1)
        def _():
            full_tile()

        @pl.when(t == nt - 1)
        def _():
            tail_tile()

    @pl.when(t == nt - 1)
    def _():
        # Single cross-lane (XLU) reduce of the lane-dense accumulators.
        pooled_sum = jnp.sum(sum_acc[...], axis=1, keepdims=True)    # (C, 1)
        pooled_max = jnp.max(max_acc[...], axis=1, keepdims=True)    # (C, 1)
        # Stack [avg | max] into one (C, 2) RHS so fc1/fc2 each run once.
        col_id = jax.lax.broadcasted_iota(jnp.int32, (c, 2), 1)
        pooled = jnp.where(col_id == 0, pooled_sum * inv_hw, pooled_max)   # (C, 2)
        h = jnp.maximum(
            jnp.dot(w1_ref[...], pooled, preferred_element_type=jnp.float32), 0.0)
        y = jnp.dot(w2_ref[...], h, preferred_element_type=jnp.float32)   # (C, 2)
        att = jax.nn.sigmoid(y[:, 0:1] + y[:, 1:2])                       # (C, 1)
        o_ref[0] = att.astype(o_ref.dtype)


def _pick_hw_tile(hw, c, itemsize, budget_bytes):
    """Lane-tile size: multiple of 128 (and of 512 when >= 512), chosen purely
    from the VMEM byte budget; the grid uses cdiv + in-kernel tail masking."""
    hw_pad = -(-hw // 128) * 128
    budget_lanes = max(128, (budget_bytes // (c * itemsize)) // 128 * 128)
    t = min(budget_lanes, hw_pad)
    if t >= 512:
        t = (t // 512) * 512     # keeps the grouped inner loop evenly divisible
    return t


# --------------------------------------------------------------------------
# Wrapper: ChannelAttention.forward
# --------------------------------------------------------------------------
def channel_attention_forward(x_nchw, fc1_w, fc2_w, *, tile_budget_bytes=4 << 20):
    """x_nchw: (N, C, H, W); fc1_w: (C//16, C, 1, 1); fc2_w: (C, C//16, 1, 1).

    Returns the (N, C, 1, 1) sigmoid channel-attention map (the PyTorch module
    hard-codes in_planes // 16 hidden channels regardless of `ratio`).
    """
    n, c, h, w = x_nchw.shape
    hw = h * w
    chid = fc1_w.shape[0]
    assert c % 8 == 0, "channel count must be a multiple of 8 (sublane tile)"
    assert fc1_w.shape[:2] == (chid, c) and fc2_w.shape[:2] == (c, chid)

    # 1x1 convs (no bias) are channel matmuls; pad the hidden dim to a sublane
    # tile (8).  Zero rows/cols are inert through ReLU.  Weights are tiny, so
    # casting them to f32 in the wrapper costs nothing.
    chid_pad = max(8, ((chid + 7) // 8) * 8)
    w1 = jnp.zeros((chid_pad, c), jnp.float32).at[:chid, :].set(
        fc1_w.reshape(chid, c).astype(jnp.float32))
    w2 = jnp.zeros((c, chid_pad), jnp.float32).at[:, :chid].set(
        fc2_w.reshape(c, chid).astype(jnp.float32))

    x3 = x_nchw.reshape(n, c, hw)           # free view: NCHW is contiguous
    itemsize = x3.dtype.itemsize
    t_hw = _pick_hw_tile(hw, c, itemsize, tile_budget_bytes)
    assert t_hw < 512 or t_hw % 512 == 0
    n_t = pl.cdiv(hw, t_hw)

    # Activation input spec; deepen the pipeline when the reduction is long.
    x_index = lambda b, t: (b, 0, t)
    if n_t >= 3:
        try:
            x_spec = pl.BlockSpec((1, c, t_hw), x_index, pipeline_mode=pl.Buffered(3))
            n_buf = 3
        except TypeError:                    # BlockSpec without pipeline_mode support
            x_spec = pl.BlockSpec((1, c, t_hw), x_index)
            n_buf = 2
    else:
        x_spec = pl.BlockSpec((1, c, t_hw), x_index)
        n_buf = 2

    # Explicit scoped-VMEM request: buffered activation slabs + weights + scratch.
    vmem_need = (n_buf * c * t_hw * itemsize
                 + 2 * 2 * chid_pad * c * 4          # both weights, double-buffered
                 + 2 * c * 128 * 4                   # lane-dense accumulators
                 + 2 * c * itemsize)                 # output block
    vmem_limit = int(min(vmem_need + (8 << 20), 56 << 20))

    cost = pl.CostEstimate(
        flops=2 * n * c * hw,                        # pooling adds/maxes dominate
        transcendentals=2 * n * c,                   # sigmoid
        bytes_accessed=(n * c * hw * itemsize        # activation stream (dominant)
                        + 2 * chid_pad * c * 4       # weights
                        + n * c * itemsize))         # attention output

    kernel = functools.partial(_channel_attention_kernel,
                               inv_hw=1.0 / hw, hw=hw, t_hw=t_hw)
    out = pl.pallas_call(
        kernel,
        out_shape=jax.ShapeDtypeStruct((n, c, 1), x_nchw.dtype),
        grid_spec=pltpu.PrefetchScalarGridSpec(
            num_scalar_prefetch=0,
            grid=(n, n_t),                           # batch parallel, H*W reduction last
            in_specs=[
                x_spec,
                pl.BlockSpec((chid_pad, c), lambda b, t: (0, 0)),
                pl.BlockSpec((c, chid_pad), lambda b, t: (0, 0)),
            ],
            out_specs=pl.BlockSpec((1, c, 1), lambda b, t: (b, 0, 0)),
            scratch_shapes=[
                pltpu.VMEM((c, 128), jnp.float32),   # lane-dense running sum
                pltpu.VMEM((c, 128), jnp.float32),   # lane-dense running max
            ],
        ),
        compiler_params=pltpu.CompilerParams(
            dimension_semantics=("parallel", "arbitrary"),
            vmem_limit_bytes=vmem_limit),
        cost_estimate=cost,
    )(x3, w1, w2)
    return out.reshape(n, c, 1, 1)


# --------------------------------------------------------------------------
# Pure-JAX reference (correctness check only)
# --------------------------------------------------------------------------
def reference_forward(x, fc1_w, fc2_w):
    n, c, h, w = x.shape
    chid = fc1_w.shape[0]
    w1 = fc1_w.reshape(chid, c)
    w2 = fc2_w.reshape(c, chid)
    avg = jnp.mean(x, axis=(2, 3))              # (N, C)
    mx = jnp.max(x, axis=(2, 3))                # (N, C)

    def mlp(v):
        return jnp.maximum(v @ w1.T, 0.0) @ w2.T

    out = jax.nn.sigmoid(mlp(avg) + mlp(mx))    # (N, C)
    return out[:, :, None, None]


# --------------------------------------------------------------------------
if __name__ == "__main__":
    key = jax.random.PRNGKey(0)
    k1, k2, k3 = jax.random.split(key, 3)

    # Small shapes consistent with the module (in_planes must be >= 16 because
    # the module hard-codes in_planes // 16 hidden channels).
    batch, in_planes, height, width = 2, 64, 16, 16
    hid = in_planes // 16                                   # 4

    x = jax.random.normal(k1, (batch, in_planes, height, width), jnp.float32)
    fc1_w = 0.2 * jax.random.normal(k2, (hid, in_planes, 1, 1), jnp.float32)
    fc2_w = 0.2 * jax.random.normal(k3, (in_planes, hid, 1, 1), jnp.float32)

    out = channel_attention_forward(x, fc1_w, fc2_w)
    out = jax.block_until_ready(out)

    ref = reference_forward(x, fc1_w, fc2_w)
    assert out.shape == ref.shape == (batch, in_planes, 1, 1)
    max_err = float(jnp.max(jnp.abs(out - ref)))
    assert jnp.allclose(out, ref, atol=1e-5, rtol=1e-5), max_err

    print("KERNEL_OK")
</pallas_src>

<mosaic_0001>
module attributes {stable_mosaic.version = 11 : i64} {
  func.func @_channel_attention_kernel(%arg0: i32, %arg1: i32, %arg2: memref<1x64x256xf32, #tpu.memory_space<vmem>>, %arg3: memref<8x64xf32, #tpu.memory_space<vmem>>, %arg4: memref<64x8xf32, #tpu.memory_space<vmem>>, %arg5: memref<1x64x1xf32, #tpu.memory_space<vmem>>, %arg6: memref<64x128xf32, #tpu.memory_space<vmem>>, %arg7: memref<64x128xf32, #tpu.memory_space<vmem>>) attributes {dimension_semantics = [#tpu.dimension_semantics<parallel>, #tpu.dimension_semantics<arbitrary>], iteration_bounds = array<i64: 2, 1>, scalar_prefetch = 0 : i64, scratch_operands = 2 : i64, tpu.core_type = #tpu.core_type<tc>, window_params = [{transform_indices = @transform_0, window_bounds = array<i64: 1, 64, 256>}, {pipeline_mode = #tpu.pipeline_mode<synchronous>, transform_indices = @transform_1, window_bounds = array<i64: 8, 64>}, {pipeline_mode = #tpu.pipeline_mode<synchronous>, transform_indices = @transform_2, window_bounds = array<i64: 64, 8>}, {transform_indices = @transform_3, window_bounds = array<i64: 1, 64, 1>}]} {
    %c0_i32 = arith.constant 0 : i32
    %0 = arith.cmpi eq, %arg1, %c0_i32 : i32
    %1 = arith.extui %0 : i1 to i32
    %c0_i32_0 = arith.constant 0 : i32
    %2 = arith.cmpi ne, %1, %c0_i32_0 : i32
    scf.if %2 {
      %cst = arith.constant 0.000000e+00 : f32
      %22 = vector.broadcast %cst : f32 to vector<64x128xf32>
      %c0_23 = arith.constant 0 : index
      %c0_24 = arith.constant 0 : index
      %23 = vector.load %arg6[%c0_23, %c0_24] : memref<64x128xf32, #tpu.memory_space<vmem>>, vector<64x128xf32>
      tpu.vector_store %arg6[%c0_23, %c0_24], %22 {strides = array<i32>} : memref<64x128xf32, #tpu.memory_space<vmem>>, vector<64x128xf32>,
      %cst_25 = arith.constant 0xFF800000 : f32
      %24 = vector.broadcast %cst_25 : f32 to vector<64x128xf32>
      %c0_26 = arith.constant 0 : index
      %c0_27 = arith.constant 0 : index
      %25 = vector.load %arg7[%c0_26, %c0_27] : memref<64x128xf32, #tpu.memory_space<vmem>>, vector<64x128xf32>
      tpu.vector_store %arg7[%c0_26, %c0_27], %24 {strides = array<i32>} : memref<64x128xf32, #tpu.memory_space<vmem>>, vector<64x128xf32>,
    } else {
    }
    %c0 = arith.constant 0 : index
    %c0_1 = arith.constant 0 : index
    %c0_2 = arith.constant 0 : index
    %3 = vector.load %arg2[%c0, %c0_1, %c0_2] : memref<1x64x256xf32, #tpu.memory_space<vmem>>, vector<1x64x128xf32>
    %4 = vector.shape_cast %3 : vector<1x64x128xf32> to vector<64x128xf32>
    %c0_3 = arith.constant 0 : index
    %c0_4 = arith.constant 0 : index
    %5 = vector.load %arg6[%c0_3, %c0_4] : memref<64x128xf32, #tpu.memory_space<vmem>>, vector<64x128xf32>
    %6 = arith.addf %5, %4 : vector<64x128xf32>
    %c0_5 = arith.constant 0 : index
    %c0_6 = arith.constant 0 : index
    %7 = vector.load %arg6[%c0_5, %c0_6] : memref<64x128xf32, #tpu.memory_space<vmem>>, vector<64x128xf32>
    tpu.vector_store %arg6[%c0_5, %c0_6], %6 {strides = array<i32>} : memref<64x128xf32, #tpu.memory_space<vmem>>, vector<64x128xf32>,
    %c0_7 = arith.constant 0 : index
    %c0_8 = arith.constant 0 : index
    %8 = vector.load %arg7[%c0_7, %c0_8] : memref<64x128xf32, #tpu.memory_space<vmem>>, vector<64x128xf32>
    %9 = arith.maximumf %8, %4 : vector<64x128xf32>
    %c0_9 = arith.constant 0 : index
    %c0_10 = arith.constant 0 : index
    %10 = vector.load %arg7[%c0_9, %c0_10] : memref<64x128xf32, #tpu.memory_space<vmem>>, vector<64x128xf32>
    tpu.vector_store %arg7[%c0_9, %c0_10], %9 {strides = array<i32>} : memref<64x128xf32, #tpu.memory_space<vmem>>, vector<64x128xf32>,
    %c0_11 = arith.constant 0 : index
    %c0_12 = arith.constant 0 : index
    %c128 = arith.constant 128 : index
    %11 = vector.load %arg2[%c0_11, %c0_12, %c128] : memref<1x64x256xf32, #tpu.memory_space<vmem>>, vector<1x64x128xf32>
    %12 = vector.shape_cast %11 : vector<1x64x128xf32> to vector<64x128xf32>
    %c0_13 = arith.constant 0 : index
    %c0_14 = arith.constant 0 : index
    %13 = vector.load %arg6[%c0_13, %c0_14] : memref<64x128xf32, #tpu.memory_space<vmem>>, vector<64x128xf32>
    %14 = arith.addf %13, %12 : vector<64x128xf32>
    %c0_15 = arith.constant 0 : index
    %c0_16 = arith.constant 0 : index
    %15 = vector.load %arg6[%c0_15, %c0_16] : memref<64x128xf32, #tpu.memory_space<vmem>>, vector<64x128xf32>
    tpu.vector_store %arg6[%c0_15, %c0_16], %14 {strides = array<i32>} : memref<64x128xf32, #tpu.memory_space<vmem>>, vector<64x128xf32>,
    %c0_17 = arith.constant 0 : index
    %c0_18 = arith.constant 0 : index
    %16 = vector.load %arg7[%c0_17, %c0_18] : memref<64x128xf32, #tpu.memory_space<vmem>>, vector<64x128xf32>
    %17 = arith.maximumf %16, %12 : vector<64x128xf32>
    %c0_19 = arith.constant 0 : index
    %c0_20 = arith.constant 0 : index
    %18 = vector.load %arg7[%c0_19, %c0_20] : memref<64x128xf32, #tpu.memory_space<vmem>>, vector<64x128xf32>
    tpu.vector_store %arg7[%c0_19, %c0_20], %17 {strides = array<i32>} : memref<64x128xf32, #tpu.memory_space<vmem>>, vector<64x128xf32>,
    %c0_i32_21 = arith.constant 0 : i32
    %19 = arith.cmpi eq, %arg1, %c0_i32_21 : i32
    %20 = arith.extui %19 : i1 to i32
    %c0_i32_22 = arith.constant 0 : i32
    %21 = arith.cmpi ne, %20, %c0_i32_22 : i32
    scf.if %21 {
      %c0_23 = arith.constant 0 : index
      %c0_24 = arith.constant 0 : index
      %22 = vector.load %arg6[%c0_23, %c0_24] : memref<64x128xf32, #tpu.memory_space<vmem>>, vector<64x128xf32>
      %cst = arith.constant dense<0.000000e+00> : vector<64xf32>
      %23 = vector.multi_reduction <add>, %22, %cst [1] : vector<64x128xf32> to vector<64xf32>
      %24 = vector.shape_cast %23 : vector<64xf32> to vector<64x1xf32>
      %c0_25 = arith.constant 0 : index
      %c0_26 = arith.constant 0 : index
      %25 = vector.load %arg7[%c0_25, %c0_26] : memref<64x128xf32, #tpu.memory_space<vmem>>, vector<64x128xf32>
      %cst_27 = arith.constant dense<0xFF800000> : vector<64xf32>
      %26 = vector.multi_reduction <maximumf>, %25, %cst_27 [1] : vector<64x128xf32> to vector<64xf32>
      %27 = vector.shape_cast %26 : vector<64xf32> to vector<64x1xf32>
      %28 = tpu.iota {dimensions = array<i32: 1>} : vector<64x2xi32>
      %c0_i32_28 = arith.constant 0 : i32
      %29 = vector.broadcast %c0_i32_28 : i32 to vector<64x2xi32>
      %30 = arith.cmpi eq, %28, %29 : vector<64x2xi32>
      %cst_29 = arith.constant 3.906250e-03 : f32
      %31 = vector.broadcast %cst_29 : f32 to vector<64x1xf32>
      %32 = arith.mulf %24, %31 : vector<64x1xf32>
      %33 = vector.shape_cast %32 : vector<64x1xf32> to vector<64x1xf32>
      %34 = vector.broadcast %33 : vector<64x1xf32> to vector<64x2xf32>
      %35 = vector.shape_cast %27 : vector<64x1xf32> to vector<64x1xf32>
      %36 = vector.broadcast %35 : vector<64x1xf32> to vector<64x2xf32>
      %37 = arith.select %30, %34, %36 : vector<64x2xi1>, vector<64x2xf32>
      %c0_30 = arith.constant 0 : index
      %c0_31 = arith.constant 0 : index
      %38 = vector.load %arg3[%c0_30, %c0_31] : memref<8x64xf32, #tpu.memory_space<vmem>>, vector<8x64xf32>
      %cst_32 = arith.constant dense<0.000000e+00> : vector<8x2xf32>
      %39 = tpu.matmul %38, %37, %cst_32 {dimension_numbers = #tpu.dot_dimension_numbers<[1], [0], [0], [1], [0, 0, 1, 1], [], []>} : vector<8x64xf32>, vector<64x2xf32>, vector<8x2xf32> -> vector<8x2xf32>
      %cst_33 = arith.constant 0.000000e+00 : f32
      %40 = vector.broadcast %cst_33 : f32 to vector<8x2xf32>
      %41 = arith.maximumf %39, %40 : vector<8x2xf32>
      %c0_34 = arith.constant 0 : index
      %c0_35 = arith.constant 0 : index
      %42 = vector.load %arg4[%c0_34, %c0_35] : memref<64x8xf32, #tpu.memory_space<vmem>>, vector<64x8xf32>
      %cst_36 = arith.constant dense<0.000000e+00> : vector<64x2xf32>
      %43 = tpu.matmul %42, %41, %cst_36 {dimension_numbers = #tpu.dot_dimension_numbers<[1], [0], [0], [1], [0, 0, 1, 1], [], []>} : vector<64x8xf32>, vector<8x2xf32>, vector<64x2xf32> -> vector<64x2xf32>
      %44 = vector.extract_strided_slice %43 {offsets = [0, 0], sizes = [64, 1], strides = [1, 1]} : vector<64x2xf32> to vector<64x1xf32>
      %45 = vector.extract_strided_slice %43 {offsets = [0, 1], sizes = [64, 1], strides = [1, 1]} : vector<64x2xf32> to vector<64x1xf32>
      %46 = arith.addf %44, %45 : vector<64x1xf32>
      %47 = arith.negf %46 : vector<64x1xf32>
      %48 = math.exp %47 : vector<64x1xf32>
      %cst_37 = arith.constant 1.000000e+00 : f32
      %49 = vector.broadcast %cst_37 : f32 to vector<64x1xf32>
      %50 = arith.addf %49, %48 : vector<64x1xf32>
      %51 = arith.divf %49, %50 : vector<64x1xf32>
      %c0_38 = arith.constant 0 : index
      %c0_39 = arith.constant 0 : index
      %c0_40 = arith.constant 0 : index
      %52 = vector.load %arg5[%c0_38, %c0_39, %c0_40] : memref<1x64x1xf32, #tpu.memory_space<vmem>>, vector<1x64x1xf32>
      %53 = vector.shape_cast %52 : vector<1x64x1xf32> to vector<64x1xf32>
      %54 = vector.shape_cast %51 : vector<64x1xf32> to vector<1x64x1xf32>
      tpu.vector_store %arg5[%c0_38, %c0_39, %c0_40], %54 {strides = array<i32>} : memref<1x64x1xf32, #tpu.memory_space<vmem>>, vector<1x64x1xf32>,
    } else {
    }
    return
  }
  func.func @transform_0(%arg0: i32, %arg1: i32) -> (i32, i32, i32) {
    %c0_i32 = arith.constant 0 : i32
    %c0_i32_0 = arith.constant 0 : i32
    return %arg0, %c0_i32, %arg1 : i32, i32, i32
  }
  func.func @transform_1(%arg0: i32, %arg1: i32) -> (i32, i32) {
    %c0_i32 = arith.constant 0 : i32
    %c0_i32_0 = arith.constant 0 : i32
    %c0_i32_1 = arith.constant 0 : i32
    return %c0_i32, %c0_i32_0 : i32, i32
  }
  func.func @transform_2(%arg0: i32, %arg1: i32) -> (i32, i32) {
    %c0_i32 = arith.constant 0 : i32
    %c0_i32_0 = arith.constant 0 : i32
    %c0_i32_1 = arith.constant 0 : i32
    return %c0_i32, %c0_i32_0 : i32, i32
  }
  func.func @transform_3(%arg0: i32, %arg1: i32) -> (i32, i32, i32) {
    %c0_i32 = arith.constant 0 : i32
    %c0_i32_0 = arith.constant 0 : i32
    %c0_i32_1 = arith.constant 0 : i32
    return %arg0, %c0_i32, %c0_i32_0 : i32, i32, i32
  }
}

</mosaic_0001>

<bundles_post_ra>
// kernel: tpu_custom_call.1
= control target key start
LH: loop header
LB: loop body
LE: loop exit
PB: predicated region body
PF: predicated region fallthrough
CT: control target
= control target key end

     0   :  { %8 = vsyncpa [#allocation5], 0  ;;  %s1289_s0 = inlined_call_operand.hbm [shape: f32[2,64,256], index: 0, kind: input, shape index: {}]   ;;  %s1290_s1 = inlined_call_operand.vmem [shape: f32[8,64], index: 1, kind: input, shape index: {}]   ;;  %s1291_s2 = inlined_call_operand.vmem [shape: f32[64,8], index: 2, kind: input, shape index: {}]   ;;  %s1292_s3 = inlined_call_operand.vmem [shape: f32[2,64,1], index: 3, kind: output, shape index: {}]  }
   0x1   :  { %10 = vsyncpa [#allocation5 + $0x1], 0  ;;  %s1096_s12 = smov 0   ;;  %s1098_s13 = smov 0  }
   0x2   :  { %s1100_s14 = smov 0   ;;  %s1102_s15 = smov 0  }
   0x3   :  { %s1104_s16 = smov 0   ;;  %s1106_s17 = smov 0  }
   0x4 LB: > { %s799_s18 = sadd.s32 4294967295, %s1067_s17   ;;  %s28_s19 = sadd.s32 1, %s1063_s16  ;;  %s1067_s17 = sphi %s1106_s17, %s16_s17   ;;  %s1063_s16 = sphi %s1104_s16, %s1300_s16   ;;  %s1059_s15 = sphi %s1102_s15, %s1299_s15   ;;  %s1055_s14 = sphi %s1100_s14, %s1298_s14   ;;  %s1051_s13 = sphi %s1098_s13, %s1297_s13   ;;  %s1047_s12 = sphi %s1096_s12, %s1296_s12  }
   0x5   : > { %p30_p0 = scmp.ge.s32.totalorder %s28_s19, 2  ;;  %s37_s20 = sadd.s32 1, %s1055_s14 }
   0x6   : > { %p44_p1 = scmp.ne.s32.totalorder %s1055_s14, %s1051_s13  ;;  %p45_p2 = scmp.eq.s32.totalorder %s1067_s17, 0 }
   0x7   : > { %s1302_s19 = smov (%p30_p0, %s28_s19), 0  ;;  %p50_p4 = scmp.ne.s32.totalorder %s1051_s13, %s1047_s12 }
   0x8   : > { %p1132_p3 = por %p45_p2, %p44_p1  ;;  %s32_s22 = ssub.s32 %s1063_s16, %s1302_s19 }
   0x9   : > { %p51_p5 = scmp.eq.s32.totalorder %s799_s18, 0  ;;  %p35_p6 = scmp.eq.s32.totalorder %s32_s22, 0 }
   0xa   : > { %p900_p8 = scmp.lt.s32.totalorder %s1067_s17, 2  ;;  %s148_s25 = sand.u32 1, %s1055_s14  }
   0xb   : > { %p1139_p7 = por %p51_p5, %p50_p4  ;;  %s829_s26 = sshll.u32 %s1063_s16, 11 }
   0xc   : > { %s1145_s24 = scalar_select %p35_p6, %s1055_s14, %s37_s20  }
   0xd   : > { %s803_s27 = sshll.u32 %s148_s25, 7  ;;  %s1152_s30 = scalar_lea.hbm %s1289_s0, %s829_s26 }
   0xe   : > { %s152_s4 = scalar_lea.vmem [#allocation4], %s803_s27  ;;  %p1156_p9 = pnand %p900_p8, %p1132_p3 }
   0xf   : > { %s161_s5 = sshll.u32 %s152_s4, 4  ;;  %s1162_s7 = scalar_lea.sflag [#allocation5], %s148_s25  ;;  %s1160_s5 = int_to_ptr.vmem [resolvable:$true] %s161_s5 }
  0x10   : > { %s987_s8 = scalar_lea.hbm %s1152_s30, 2048  ;;  %p989_p11 = pneg %p1156_p9 }
  0x11   : > { %p988_p10 = scmp.ne.s32.totalorder %s1152_s30, %s987_s8  ;;  %s992_s11 = scalar_lea.hbm %s1289_s0, 4096 }
  0x12   : > { %p993_p0 = scmp.lt.u32.totalorder %s1152_s30, %s1289_s0  ;;  %p994_p1 = scmp.lt.u32.totalorder %s992_s11, %s987_s8 }
  0x13   : > { %p990_p12 = pnand %p989_p11, %p988_p10  ;;  %p996_p3 = scmp.lt.u32.totalorder %s987_s8, %s1152_s30 }
  0x14   : > { %p995_p2 = por %p994_p1, %p993_p0 }
  0x15   : > { %p991_p13 = pneg %p990_p12 }
  0x16   : > { %p997_p4 = por %p996_p3, %p995_p2 }
  0x18   : > { %p998_p5 = pnand %p997_p4, %p991_p13 }
  0x1a   : > { %1001 = shalt.err (!%p998_p5)
}
  0x1b   : > { %s1002_s20 = scalar_lea.vmem %s1160_s5, 2048  ;;  %s1069_s21 = smov [#allocation4]  }
  0x1c   : > { %p1003_p6 = scmp.ne.s32.totalorder %s1160_s5, %s1002_s20  ;;  %s1007_s22 = sshll.u32 %s1069_s21, 4  ;;  %s1008_s22 = int_to_ptr.vmem [resolvable:$false] %s1007_s22 }
  0x1d   : > { %s1009_s25 = scalar_lea.vmem %s1008_s22, 4096  ;;  %p1010_p12 = scmp.lt.s32.totalorder %s1160_s5, %s1008_s22 }
  0x1e   : > { %p1005_p8 = pnand %p1003_p6, %p989_p11  ;;  %p1011_p0 = scmp.lt.s32.totalorder %s1009_s25, %s1002_s20 }
  0x20   : > { %p1006_p10 = pneg %p1005_p8  ;;  %p1012_p1 = por %p1011_p0, %p1010_p12 }
  0x22   : > { %p1013_p2 = pnand %p1012_p1, %p1006_p10 }
  0x24   : > { %1016 = shalt.err (!%p1013_p2)
}
  0x25   : > { %s1070_s26 = smov 256   ;;  %s1071_s27 = smov 16  }
  0x26   : > { %899 = dma.hbm_to_vmem [thread:$0]  (!%p1156_p9), %s1152_s30, 2048, %s1160_s5, %s1162_s7, %s1070_s26, %s1070_s26, %s1071_s27  }
  0x27   : > { %p806_p11 = scmp.ge.s32.totalorder %s1067_s17, 1  ;;  %p169_p13 = scmp.lt.s32.totalorder %s1067_s17, 3 }
  0x29   : > { %p170_p3 = pnand %p806_p11, %p169_p13 }
  0x2a   : > { %s175_s28 = sand.u32 (!%p170_p3), 1, %s1051_s13  }
  0x2b   : > { %173 = sbr.rel (%p170_p3) target bundleno = 818 (0x332), region = 32  ;;  %s807_s29 = sshll.u32 (!%p170_p3), %s175_s28, 7 }
  0x2c   : > { %s176_s4 = scalar_lea.sflag (!%p170_p3), [#allocation5], %s175_s28  ;;  %s1193_s8 = scalar_lea.vmem (!%p170_p3), [#allocation4], %s807_s29 }
  0x32   : > { %1042 = dma.done.wait (%p1139_p7), %s176_s4, 2048  }
  0x33   : > { %1044 = vsyncadd (%p1139_p7), %s176_s4, 4294965248  ;;  %v228_v0 = vld [vmem:[%s1193_s8] sm:$0xff]  ;;  %v284_v1 = vld [vmem:[%s1193_s8 + $0x8] sm:$0xff]  ;;  %v1072_v30 = vmov 0.0|0.0   ;;  %vm1073_vm0 = vmmov 0   ;;  %v1074_v33 = vmov 0.0   ;;  %v391_v34 = vlaneseq }
  0x34   : > { %v229_v2 = vld [vmem:[%s1193_s8 + $0x10] sm:$0xff]  ;;  %v324_v3 = vmax.f32 %v228_v0, %v284_v1  ;;  %v300_v4 = vadd.f32 %v284_v1, %v228_v0  ;;  %v285_v5 = vld [vmem:[%s1193_s8 + $0x18] sm:$0xff]  ;;  %v230_v10 = vld [vmem:[%s1193_s8 + $0x20] sm:$0xff]  ;;  %882 = vmatprep.subr.bf16.mxu0 %v1072_v30  ;;  %865 = vmatprep.mubr.msk.f32.mxu0 %vm1073_vm0, %v1074_v33  ;;  %vm411_vm2 = vcmask 523264   ;;  %vm494_vm3 = vcmask 64512   ;;  %s1075_s4 = smov 127  }
  0x35   : > { %v325_v6 = vmax.f32 %v229_v2, %v285_v5  ;;  %v301_v7 = vadd.f32 %v285_v5, %v229_v2  ;;  %v231_v8 = vld [vmem:[%s1193_s8 + $0x30] sm:$0xff]  ;;  %v287_v9 = vld [vmem:[%s1193_s8 + $0x38] sm:$0xff]  ;;  %v286_v11 = vld [vmem:[%s1193_s8 + $0x28] sm:$0xff]  ;;  %v392_v37 = vand.u32 127, %v391_v34  ;;  %p203_p7 = scmp.lt.s32.totalorder %s1059_s15, 1  ;;  %vm712_vm4 = vcmask 7168  }
  0x36   : > { %375 = vmax.xlane.f32.xlu1 %v324_v3  ;;  %351 = vadd.xlane.f32.xlu0 %v300_v4  ;;  %v303_v12 = vadd.f32 %v287_v9, %v231_v8  ;;  %v302_v13 = vadd.f32 %v286_v11, %v230_v10  ;;  %v327_v14 = vmax.f32 %v231_v8, %v287_v9  ;;  %v233_v16 = vld [vmem:[%s1193_s8 + $0x50] sm:$0xff]  ;;  %v289_v17 = vld [vmem:[%s1193_s8 + $0x58] sm:$0xff]  ;;  %v232_v18 = vld [vmem:[%s1193_s8 + $0x40] sm:$0xff] }
  0x37   : > { %v326_v15 = vmax.f32 %v230_v10, %v286_v11  ;;  %v288_v19 = vld [vmem:[%s1193_s8 + $0x48] sm:$0xff]  ;;  %v305_v20 = vadd.f32 %v289_v17, %v233_v16  ;;  %v329_v22 = vmax.f32 %v233_v16, %v289_v17  ;;  %v235_v24 = vld [vmem:[%s1193_s8 + $0x70] sm:$0xff]  ;;  %v291_v25 = vld [vmem:[%s1193_s8 + $0x78] sm:$0xff]  ;;  %vm393_vm1 = vcmp.eq.s32.totalorder %v392_v37, 0  ;;  %s1304_s15 = smov (!%p203_p7, %s1059_s15), 1 }
  0x38   : > { %v304_v21 = vadd.f32 %v288_v19, %v232_v18  ;;  %v328_v23 = vmax.f32 %v232_v18, %v288_v19  ;;  %v234_v26 = vld [vmem:[%s1193_s8 + $0x60] sm:$0xff]  ;;  %v290_v27 = vld [vmem:[%s1193_s8 + $0x68] sm:$0xff]  ;;  %v307_v28 = vadd.f32 %v291_v25, %v235_v24  ;;  %v331_v31 = vmax.f32 %v235_v24, %v291_v25  ;;  %v492_v18 = vld [vmem:[%s1291_s2 + $0x30] sm:$0xff]  ;;  %s830_s8 = sshll.u32 %s1304_s15, 6 }
  0x39   : > { %v306_v29 = vadd.f32 %v290_v27, %v234_v26  ;;  %v330_v32 = vmax.f32 %v234_v26, %v290_v27  ;;  %v410_v8 = vld [vmem:[%s1290_s1] sm:$0xff]  ;;  %v491_v17 = vld [vmem:[%s1291_s2 + $0x28] sm:$0xff]  ;;  %v493_v19 = vld [vmem:[%s1291_s2 + $0x38] sm:$0xff]  ;;  %s207_s5 = scalar_lea.vmem %s1292_s3, %s830_s8 }
  0x3a   : > { %377 = vmax.xlane.f32.xlu1 %v325_v6  ;;  %353 = vadd.xlane.f32.xlu0 %v301_v7  ;;  %v486_v9 = vld [vmem:[%s1291_s2] sm:$0xff] }
  0x3b   : > { %870 = vmatprep.mubr.msk.f32.mxu1 %vm494_vm3, %v486_v9  ;;  %v490_v16 = vld [vmem:[%s1291_s2 + $0x20] sm:$0xff] }
  0x3e   : > { %357 = vadd.xlane.f32.xlu1 %v303_v12  ;;  %355 = vadd.xlane.f32.xlu0 %v302_v13  ;;  %v487_v13 = vld [vmem:[%s1291_s2 + $0x8] sm:$0xff] }
  0x42   : > { %381 = vmax.xlane.f32.xlu1 %v327_v14  ;;  %379 = vmax.xlane.f32.xlu0 %v326_v15  ;;  %v488_v14 = vld [vmem:[%s1291_s2 + $0x10] sm:$0xff]  ;;  %v489_v15 = vld [vmem:[%s1291_s2 + $0x18] sm:$0xff] }
  0x46   : > { %361 = vadd.xlane.f32.xlu1 %v305_v20  ;;  %359 = vadd.xlane.f32.xlu0 %v304_v21 }
  0x4a   : > { %385 = vmax.xlane.f32.xlu1 %v329_v22  ;;  %383 = vmax.xlane.f32.xlu0 %v328_v23 }
  0x4e   : > { %365 = vadd.xlane.f32.xlu1 %v307_v28  ;;  %363 = vadd.xlane.f32.xlu0 %v306_v29 }
  0x52   : > { %389 = vmax.xlane.f32.xlu1 %v331_v31  ;;  %387 = vmax.xlane.f32.xlu0 %v330_v32 }
  0xc3   : > { %v376_v35 = vpop.xlane.xlu1 %375  ;;  %v352_v36 = vpop.xlane.xlu0 %351 }
  0xc4   : > { %v394_v38 = vmul.f32 0.00390625, %v352_v36 }
  0xc6   : > { %v402_v42 = vsel %vm393_vm1, %v394_v38, %v376_v35 }
  0xc7   : > { %v378_v39 = vpop.xlane.xlu1 %377  ;;  %v354_v40 = vpop.xlane.xlu0 %353 }
  0xc8   : > { %v395_v41 = vmul.f32 0.00390625, %v354_v40 }
  0xca   : > { %v403_v43 = vsel %vm393_vm1, %v395_v41, %v378_v39 }
  0xcb   : > { %v358_v44 = vpop.xlane.xlu1 %357  ;;  %v356_v45 = vpop.xlane.xlu0 %355  ;;  %v883_v46 = vpack.c.bf16 %v403_v43, %v402_v42 }
  0xcc   : > { %v397_v47 = vmul.f32 0.00390625, %v358_v44  ;;  %v396_v48 = vmul.f32 0.00390625, %v356_v45 }
  0xcd   : > { %884 = vmatpush3.bf16.msra.mxu0 %v883_v46 }
  0xce   : > { %885 = vmatprep.subr.bf16.mxu0 %v1072_v30 }
  0xcf   : > { %v382_v49 = vpop.xlane.xlu1 %381  ;;  %v380_v50 = vpop.xlane.xlu0 %379 }
  0xd0   : > { %v405_v51 = vsel %vm393_vm1, %v397_v47, %v382_v49  ;;  %v404_v52 = vsel %vm393_vm1, %v396_v48, %v380_v50 }
  0xd1   : > { %v886_v53 = vpack.c.bf16 %v405_v51, %v404_v52 }
  0xd3   : > { %v362_v54 = vpop.xlane.xlu1 %361  ;;  %887 = vmatpush3.bf16.msra.mxu0 %v886_v53  ;;  %v360_v55 = vpop.xlane.xlu0 %359 }
  0xd4   : > { %888 = vmatprep.subr.bf16.mxu0 %v1072_v30  ;;  %v399_v56 = vmul.f32 0.00390625, %v362_v54  ;;  %v398_v57 = vmul.f32 0.00390625, %v360_v55 }
  0xd7   : > { %v386_v58 = vpop.xlane.xlu1 %385  ;;  %v384_v59 = vpop.xlane.xlu0 %383 }
  0xd8   : > { %v407_v60 = vsel %vm393_vm1, %v399_v56, %v386_v58  ;;  %v406_v61 = vsel %vm393_vm1, %v398_v57, %v384_v59 }
  0xd9   : > { %v889_v62 = vpack.c.bf16 %v407_v60, %v406_v61 }
  0xdb   : > { %v366_v63 = vpop.xlane.xlu1 %365  ;;  %890 = vmatpush3.bf16.msra.mxu0 %v889_v62  ;;  %v364_v0 = vpop.xlane.xlu0 %363 }
  0xdc   : > { %891 = vmatprep.subr.bf16.mxu0 %v1072_v30  ;;  %v401_v1 = vmul.f32 0.00390625, %v366_v63  ;;  %v400_v2 = vmul.f32 0.00390625, %v364_v0 }
  0xdf   : > { %v390_v3 = vpop.xlane.xlu1 %389  ;;  %v388_v4 = vpop.xlane.xlu0 %387 }
  0xe0   : > { %v409_v5 = vsel %vm393_vm1, %v401_v1, %v390_v3  ;;  %v408_v6 = vsel %vm393_vm1, %v400_v2, %v388_v4 }
  0xe1   : > { %v892_v7 = vpack.c.bf16 %v409_v5, %v408_v6 }
  0xe3   : > { %893 = vmatpush3.bf16.msra.mxu0 %v892_v7 }
  0xe6   : > { %866 = vmatmul.mubr.msk.f32.vlgmr.msra.gmra.mrb[0].mxu0 %vm411_vm2, %v410_v8 }
 0x1b9   : > { %v481_v10 = vpop.f32.mrb[0].mxu0 }
 0x1ba   : > { %v485_v11 = vmax.f32 %v481_v10, 0.0  ;;  %v867_v12 = vpop.f32.mrb[1].mxu0 }
 0x1bc   : > { %868 = vmatprep.subr.mxu1 %v485_v11 }
 0x1bd   : > { %869 = vmatpush3.msra.mxu1 %v485_v11 }
 0x1be   : > { %871 = vmatmul.mubr.msk.f32.vlgmr.msra.gmra.mrb[0].mxu1 %vm494_vm3, %v487_v13 }
 0x1bf   : > { %873 = vmatprep.mubr.msk.f32.mxu1 %vm494_vm3, %v488_v14 }
 0x1c2   : > { %874 = vmatmul.mubr.msk.f32.gmra.mrb[2].mxu1 %vm494_vm3, %v489_v15 }
 0x1c3   : > { %876 = vmatprep.mubr.msk.f32.mxu1 %vm494_vm3, %v490_v16 }
 0x1c6   : > { %877 = vmatmul.mubr.msk.f32.gmra.mrb[4].mxu1 %vm494_vm3, %v491_v17 }
 0x1c7   : > { %879 = vmatprep.mubr.msk.f32.mxu1 %vm494_vm3, %v492_v18 }
 0x1ca   : > { %880 = vmatmul.mubr.msk.f32.gmra.mrb[6].mxu1 %vm494_vm3, %v493_v19 }
 0x291   : > { %v872_v20 = vpop.f32.mrb[0].mxu1 }
 0x292   : > { %634 = vrot.lane.b32.xlu1 %v872_v20, %s1075_s4  ;;  %v585_v21 = vpop.f32.mrb[1].mxu1 }
 0x293   : > { %632 = vrot.lane.b32.xlu0 %v585_v21, %s1075_s4 }
 0x295   : > { %v875_v22 = vpop.f32.mrb[2].mxu1 }
 0x296   : > { %638 = vrot.lane.b32.xlu1 %v875_v22, %s1075_s4  ;;  %v595_v23 = vpop.f32.mrb[3].mxu1 }
 0x299   : > { %v878_v24 = vpop.f32.mrb[4].mxu1 }
 0x29a   : > { %636 = vrot.lane.b32.xlu1 %v595_v23, %s1075_s4  ;;  %v605_v25 = vpop.f32.mrb[5].mxu1 }
 0x29b   : > { %640 = vrot.lane.b32.xlu0 %v605_v25, %s1075_s4 }
 0x29d   : > { %v881_v26 = vpop.f32.mrb[6].mxu1 }
 0x29e   : > { %642 = vrot.lane.b32.xlu1 %v878_v24, %s1075_s4  ;;  %v615_v27 = vpop.f32.mrb[7].mxu1 }
 0x29f   : > { %644 = vrot.lane.b32.xlu0 %v615_v27, %s1075_s4 }
 0x2a2   : > { %646 = vrot.lane.b32.xlu1 %v881_v26, %s1075_s4 }
 0x304   : > { %v635_v28 = vpop.permute.xlu1 %634 }
 0x305   : > { %v657_v29 = vadd.f32 %v872_v20, %v635_v28  ;;  %v633_v30 = vpop.permute.xlu0 %632 }
 0x306   : > { %v656_v31 = vadd.f32 %v633_v30, %v585_v21 }
 0x307   : > { %v820_v32 = vmul.f32 -1.442695, %v657_v29 }
 0x308   : > { %v819_v33 = vmul.f32 -1.442695, %v656_v31  ;;  %v639_v34 = vpop.permute.xlu1 %638 }
 0x309   : > { %955 = vpow2.f32 %v820_v32  ;;  %v659_v35 = vadd.f32 %v875_v22, %v639_v34 }
 0x30a   : > { %957 = vpow2.f32 %v819_v33 }
 0x30b   : > { %v822_v36 = vmul.f32 -1.442695, %v659_v35 }
 0x30c   : > { %v637_v37 = vpop.permute.xlu1 %636 }
 0x30d   : > { %959 = vpow2.f32 %v822_v36  ;;  %v658_v38 = vadd.f32 %v637_v37, %v595_v23  ;;  %v641_v39 = vpop.permute.xlu0 %640 }
 0x30e   : > { %v660_v40 = vadd.f32 %v641_v39, %v605_v25 }
 0x30f   : > { %v821_v41 = vmul.f32 -1.442695, %v658_v38 }
 0x310   : > { %v823_v42 = vmul.f32 -1.442695, %v660_v40  ;;  %v643_v43 = vpop.permute.xlu1 %642 }
 0x311   : > { %961 = vpow2.f32 %v821_v41  ;;  %v661_v44 = vadd.f32 %v878_v24, %v643_v43  ;;  %v645_v45 = vpop.permute.xlu0 %644 }
 0x312   : > { %963 = vpow2.f32 %v823_v42  ;;  %v662_v46 = vadd.f32 %v645_v45, %v615_v27 }
 0x313   : > { %v956_v47 = vpop.eup %955  ;;  %v824_v48 = vmul.f32 -1.442695, %v661_v44 }
 0x314   : > { %v958_v49 = vpop.eup %957  ;;  %v689_v50 = vadd.f32 1.0, %v956_v47  ;;  %v825_v51 = vmul.f32 -1.442695, %v662_v46  ;;  %v647_v52 = vpop.permute.xlu1 %646 }
 0x315   : > { %v688_v53 = vadd.f32 1.0, %v958_v49  ;;  %965 = vpow2.f32 %v824_v48  ;;  %v663_v54 = vadd.f32 %v881_v26, %v647_v52 }
 0x316   : > { %967 = vrcp.f32 %v689_v50 }
 0x317   : > { %v960_v55 = vpop.eup %959  ;;  %969 = vrcp.f32 %v688_v53  ;;  %v826_v56 = vmul.f32 -1.442695, %v663_v54 }
 0x318   : > { %v691_v57 = vadd.f32 1.0, %v960_v55  ;;  %971 = vpow2.f32 %v825_v51 }
 0x319   : > { %973 = vpow2.f32 %v826_v56 }
 0x31a   : > { %975 = vrcp.f32 %v691_v57 }
 0x31b   : > { %v962_v58 = vpop.eup %961 }
 0x31c   : > { %v964_v59 = vpop.eup %963  ;;  %v690_v60 = vadd.f32 1.0, %v962_v58 }
 0x31d   : > { %v692_v61 = vadd.f32 1.0, %v964_v59 }
 0x31e   : > { %977 = vrcp.f32 %v690_v60 }
 0x31f   : > { %v966_v62 = vpop.eup %965  ;;  %979 = vrcp.f32 %v692_v61 }
 0x320   : > { %v968_v63 = vpop.eup %967  ;;  %v693_v0 = vadd.f32 1.0, %v966_v62 }
 0x321   : > { %v970_v1 = vpop.eup %969  ;;  %714 = vst.msk [vmem:[%s207_s5 + $0x8] sm:$0xff] %vm712_vm4, %v968_v63 }
 0x322   : > { %v972_v2 = vpop.eup %971  ;;  %713 = vst.msk [vmem:[%s207_s5] sm:$0xff] %vm712_vm4, %v970_v1  ;;  %981 = vrcp.f32 %v693_v0 }
 0x323   : > { %v974_v3 = vpop.eup %973  ;;  %v694_v4 = vadd.f32 1.0, %v972_v2 }
 0x324   : > { %v976_v5 = vpop.eup %975  ;;  %v695_v6 = vadd.f32 1.0, %v974_v3 }
 0x325   : > { %716 = vst.msk [vmem:[%s207_s5 + $0x18] sm:$0xff] %vm712_vm4, %v976_v5  ;;  %983 = vrcp.f32 %v694_v4 }
 0x326   : > { %985 = vrcp.f32 %v695_v6 }
 0x328   : > { %v978_v7 = vpop.eup %977 }
 0x329   : > { %v980_v8 = vpop.eup %979  ;;  %715 = vst.msk [vmem:[%s207_s5 + $0x10] sm:$0xff] %vm712_vm4, %v978_v7 }
 0x32a   : > { %717 = vst.msk [vmem:[%s207_s5 + $0x20] sm:$0xff] %vm712_vm4, %v980_v8 }
 0x32c   : > { %v982_v9 = vpop.eup %981 }
 0x32d   : > { %718 = vst.msk [vmem:[%s207_s5 + $0x28] sm:$0xff] %vm712_vm4, %v982_v9 }
 0x32f   : > { %v984_v10 = vpop.eup %983 }
 0x330   : > { %v986_v11 = vpop.eup %985  ;;  %719 = vst.msk [vmem:[%s207_s5 + $0x30] sm:$0xff] %vm712_vm4, %v984_v10 }
 0x331   : > { %720 = vst.msk [vmem:[%s207_s5 + $0x38] sm:$0xff] %vm712_vm4, %v986_v11 }
 0x332 PF: > { %s16_s17 = sadd.s32 1, %s1067_s17   ;;  %s1296_s12 = smov %s1051_s13 }
 0x333   : > { %p13_p9 = scmp.ge.s32.totalorder %s16_s17, 4   ;;  %s1297_s13 = smov %s1055_s14 }
 0x334   : > { %s1298_s14 = smov %s1145_s24  ;;  %s1299_s15 = smov %s1063_s16 }
 0x335   : > { %s1300_s16 = smov %s1302_s19  ;;  %15 = sbr.rel (!%p13_p9) target bundleno = 4 (0x4), region = 80 }
 0x33c   :  { %742 = vsyncpa [#allocation5], 1 }
 0x33d   :  { %744 = vsyncpa [#allocation5 + $0x1], 1 }

</bundles_post_ra>
